<compile_context>
chip_gen: v6e
topology: v6e:2x2x1
jax: 0.10.0
libtpu: 0.0.40
codegen_flags: <defaults>
</compile_context>

<pallas_src>
import numpy as np
import jax
import jax.numpy as jnp
from jax.experimental import pallas as pl
from jax.experimental.pallas import tpu as pltpu


def _bilinear_matrix(out_size, in_size):
    """Interpolation matrix matching torch.nn.Upsample(mode='bilinear', align_corners=False)."""
    scale = in_size / out_size
    o = np.arange(out_size)
    src = (o + 0.5) * scale - 0.5
    src = np.clip(src, 0.0, None)
    i0 = np.minimum(np.floor(src).astype(np.int64), in_size - 1)
    i1 = np.minimum(i0 + 1, in_size - 1)
    frac = (src - i0).astype(np.float32)
    M = np.zeros((out_size, in_size), np.float32)
    M[o, i0] += 1.0 - frac
    M[o, i1] += frac
    return M


def _gen_block_kernel(xcolT_ref, noise_ref, cwT_ref, cb_ref, nw_ref,
                      scale_ref, shift_ref, o_ref):
    n, c_out, hw = o_ref.shape
    # 3x3 conv for the WHOLE batch as one lane-dense matmul:
    #   (Cout, 9*Cin) @ (9*Cin, N*HW) -> (Cout, N*HW)
    y = jnp.dot(cwT_ref[...], xcolT_ref[...], preferred_element_type=jnp.float32)
    y = y + cb_ref[...]                              # conv bias    (Cout,1) bcast over lanes
    y = y + nw_ref[...] * noise_ref[...]             # InjectNoise  (Cout,1)*(1,N*HW)
    y = jnp.where(y >= 0.0, y, 0.2 * y)              # LeakyReLU(0.2)

    scale = scale_ref[...]                           # (Cout, N) per-sample style scale
    shift = shift_ref[...]                           # (Cout, N) per-sample style shift

    # Per-sample InstanceNorm (biased variance, eps=1e-5) + AdaIN affine.
    # HW is a multiple of 128 -> lane-aligned static slices, no relayout.
    for s in range(n):
        ys = y[:, s * hw:(s + 1) * hw]                               # (Cout, HW)
        mean = jnp.mean(ys, axis=1, keepdims=True)                   # (Cout, 1)
        var = jnp.mean((ys - mean) ** 2, axis=1, keepdims=True)      # (Cout, 1)
        yn = (ys - mean) * jax.lax.rsqrt(var + 1e-5)                 # rsqrt -> EUP slot
        o_ref[s] = (scale[:, s:s + 1] * yn + shift[:, s:s + 1]).astype(o_ref.dtype)


def micro_stylegan_generator_block(x, w, noise, params, starting_size, use_upsample=True):
    """x: (N, Cin, H, W) NCHW; w: (N, w_dim); noise: (N, starting_size, starting_size)."""
    N, Cin = x.shape[0], x.shape[1]
    if use_upsample:
        Mh = jnp.asarray(_bilinear_matrix(starting_size, x.shape[2]))
        Mw = jnp.asarray(_bilinear_matrix(starting_size, x.shape[3]))
        x = jnp.einsum('oh,pw,nchw->ncop', Mh, Mw, x)
    H, W_sp = x.shape[2], x.shape[3]
    HW = H * W_sp
    Cout = params['conv_w'].shape[0]

    # ---- glue: im2col directly from padded NCHW (no NHWC transpose) ----
    # columns ordered sample-major then spatial: col = n*HW + h*W + w
    # rows ordered tap-major then channel:       row = (kh*3 + kw)*Cin + ci
    x_pad = jnp.pad(x, ((0, 0), (0, 0), (1, 1), (1, 1)))
    taps = [x_pad[:, :, dh:dh + H, dw:dw + W_sp]
            for dh in range(3) for dw in range(3)]
    x_colT = jnp.stack(taps, axis=1).reshape(N, 9 * Cin, HW)
    x_colT = jnp.transpose(x_colT, (1, 0, 2)).reshape(9 * Cin, N * HW)

    # ---- glue: parameter packing (channel-major rows -> lane-dense compute) ----
    cwT = jnp.transpose(params['conv_w'], (0, 2, 3, 1)).reshape(Cout, 9 * Cin)  # (co, kh*kw*ci)
    cb = params['conv_b'].reshape(Cout, 1)
    nw = params['noise_w'].reshape(Cout, 1)
    noise_flat = noise.reshape(1, N * HW).astype(jnp.float32)

    # ---- hoisted style affine: one batched matmul per scale/shift ----
    scaleT = (w @ params['scale_w'].T + params['scale_b']).T.astype(jnp.float32)  # (Cout, N)
    shiftT = (w @ params['shift_w'].T + params['shift_b']).T.astype(jnp.float32)  # (Cout, N)

    out = pl.pallas_call(
        _gen_block_kernel,
        out_shape=jax.ShapeDtypeStruct((N, Cout, HW), jnp.float32),
        grid_spec=pltpu.PrefetchScalarGridSpec(
            num_scalar_prefetch=0,
            grid=(1,),  # whole batch in one step: all operands total < 200 KiB of VMEM
            in_specs=[
                pl.BlockSpec((9 * Cin, N * HW), lambda b: (0, 0)),
                pl.BlockSpec((1, N * HW), lambda b: (0, 0)),
                pl.BlockSpec((Cout, 9 * Cin), lambda b: (0, 0)),
                pl.BlockSpec((Cout, 1), lambda b: (0, 0)),
                pl.BlockSpec((Cout, 1), lambda b: (0, 0)),
                pl.BlockSpec((Cout, N), lambda b: (0, 0)),
                pl.BlockSpec((Cout, N), lambda b: (0, 0)),
            ],
            out_specs=pl.BlockSpec((N, Cout, HW), lambda b: (0, 0, 0)),
        ),
        compiler_params=pltpu.CompilerParams(dimension_semantics=("parallel",)),
    )(x_colT, noise_flat, cwT, cb, nw, scaleT, shiftT)

    # (N, Cout, HW) -> NCHW: pure reshape, no transpose needed.
    return out.reshape(N, Cout, H, W_sp)


def _reference_forward(x, w, noise, params, starting_size, use_upsample=True):
    """Pure-JAX reference of the same forward pass (for verification)."""
    if use_upsample:
        Mh = jnp.asarray(_bilinear_matrix(starting_size, x.shape[2]))
        Mw = jnp.asarray(_bilinear_matrix(starting_size, x.shape[3]))
        x = jnp.einsum('oh,pw,nchw->ncop', Mh, Mw, x)
    y = jax.lax.conv_general_dilated(
        x, params['conv_w'], window_strides=(1, 1), padding=((1, 1), (1, 1)),
        dimension_numbers=('NCHW', 'OIHW', 'NCHW'))
    y = y + params['conv_b'][None, :, None, None]
    y = y + params['noise_w'][None, :, None, None] * noise[:, None, :, :]
    y = jnp.where(y >= 0.0, y, 0.2 * y)
    mean = jnp.mean(y, axis=(2, 3), keepdims=True)
    var = jnp.mean((y - mean) ** 2, axis=(2, 3), keepdims=True)
    yn = (y - mean) / jnp.sqrt(var + 1e-5)
    scale = (w @ params['scale_w'].T + params['scale_b'])[:, :, None, None]
    shift = (w @ params['shift_w'].T + params['shift_b'])[:, :, None, None]
    return scale * yn + shift


if __name__ == "__main__":
    # Small shapes consistent with the module.
    N, in_chan, out_chan, w_dim = 2, 4, 8, 32
    in_size, starting_size = 8, 16

    key = jax.random.PRNGKey(0)
    keys = jax.random.split(key, 9)

    params = {
        'conv_w': 0.1 * jax.random.normal(keys[0], (out_chan, in_chan, 3, 3), jnp.float32),
        'conv_b': 0.1 * jax.random.normal(keys[1], (out_chan,), jnp.float32),
        'noise_w': jax.random.normal(keys[2], (out_chan,), jnp.float32),   # InjectNoise weight
        'scale_w': 0.1 * jax.random.normal(keys[3], (out_chan, w_dim), jnp.float32),
        'scale_b': 0.1 * jax.random.normal(keys[4], (out_chan,), jnp.float32),
        'shift_w': 0.1 * jax.random.normal(keys[5], (out_chan, w_dim), jnp.float32),
        'shift_b': 0.1 * jax.random.normal(keys[6], (out_chan,), jnp.float32),
    }

    x = jax.random.normal(keys[7], (N, in_chan, in_size, in_size), jnp.float32)
    w = jax.random.normal(keys[8], (N, w_dim), jnp.float32)
    # The PyTorch forward draws fresh noise each call; here we draw it deterministically.
    noise = jax.random.normal(jax.random.PRNGKey(42), (N, starting_size, starting_size), jnp.float32)

    out = micro_stylegan_generator_block(x, w, noise, params, starting_size, use_upsample=True)
    out = jax.block_until_ready(out)

    ref = jax.block_until_ready(
        _reference_forward(x, w, noise, params, starting_size, use_upsample=True))

    assert out.shape == (N, out_chan, starting_size, starting_size), out.shape
    max_err = float(jnp.max(jnp.abs(out - ref)))
    if max_err > 5e-4:
        raise AssertionError(f"Pallas kernel mismatch vs reference: max abs err {max_err}")

    print("KERNEL_OK")
</pallas_src>

<mosaic_0001>
module attributes {stable_mosaic.version = 11 : i64} {
  func.func @_gen_block_kernel(%arg0: i32, %arg1: memref<36x512xf32, #tpu.memory_space<vmem>>, %arg2: memref<1x512xf32, #tpu.memory_space<vmem>>, %arg3: memref<8x36xf32, #tpu.memory_space<vmem>>, %arg4: memref<8x1xf32, #tpu.memory_space<vmem>>, %arg5: memref<8x1xf32, #tpu.memory_space<vmem>>, %arg6: memref<8x2xf32, #tpu.memory_space<vmem>>, %arg7: memref<8x2xf32, #tpu.memory_space<vmem>>, %arg8: memref<2x8x256xf32, #tpu.memory_space<vmem>>) attributes {dimension_semantics = [#tpu.dimension_semantics<parallel>], iteration_bounds = array<i64: 1>, scalar_prefetch = 0 : i64, scratch_operands = 0 : i64, tpu.core_type = #tpu.core_type<tc>, window_params = [{pipeline_mode = #tpu.pipeline_mode<synchronous>, transform_indices = @transform_0, window_bounds = array<i64: 36, 512>}, {pipeline_mode = #tpu.pipeline_mode<synchronous>, transform_indices = @transform_1, window_bounds = array<i64: 1, 512>}, {pipeline_mode = #tpu.pipeline_mode<synchronous>, transform_indices = @transform_2, window_bounds = array<i64: 8, 36>}, {pipeline_mode = #tpu.pipeline_mode<synchronous>, transform_indices = @transform_3, window_bounds = array<i64: 8, 1>}, {pipeline_mode = #tpu.pipeline_mode<synchronous>, transform_indices = @transform_4, window_bounds = array<i64: 8, 1>}, {pipeline_mode = #tpu.pipeline_mode<synchronous>, transform_indices = @transform_5, window_bounds = array<i64: 8, 2>}, {pipeline_mode = #tpu.pipeline_mode<synchronous>, transform_indices = @transform_6, window_bounds = array<i64: 8, 2>}, {pipeline_mode = #tpu.pipeline_mode<synchronous>, transform_indices = @transform_7, window_bounds = array<i64: 2, 8, 256>}]} {
    %c0 = arith.constant 0 : index
    %c0_0 = arith.constant 0 : index
    %0 = vector.load %arg3[%c0, %c0_0] : memref<8x36xf32, #tpu.memory_space<vmem>>, vector<8x36xf32>
    %c0_1 = arith.constant 0 : index
    %c0_2 = arith.constant 0 : index
    %1 = vector.load %arg1[%c0_1, %c0_2] : memref<36x512xf32, #tpu.memory_space<vmem>>, vector<36x512xf32>
    %cst = arith.constant dense<0.000000e+00> : vector<8x512xf32>
    %2 = tpu.matmul %0, %1, %cst {dimension_numbers = #tpu.dot_dimension_numbers<[1], [0], [0], [1], [0, 0, 1, 1], [], []>} : vector<8x36xf32>, vector<36x512xf32>, vector<8x512xf32> -> vector<8x512xf32>
    %c0_3 = arith.constant 0 : index
    %c0_4 = arith.constant 0 : index
    %3 = vector.load %arg4[%c0_3, %c0_4] : memref<8x1xf32, #tpu.memory_space<vmem>>, vector<8x1xf32>
    %4 = vector.broadcast %3 : vector<8x1xf32> to vector<8x512xf32>
    %5 = arith.addf %2, %4 : vector<8x512xf32>
    %c0_5 = arith.constant 0 : index
    %c0_6 = arith.constant 0 : index
    %6 = vector.load %arg5[%c0_5, %c0_6] : memref<8x1xf32, #tpu.memory_space<vmem>>, vector<8x1xf32>
    %c0_7 = arith.constant 0 : index
    %c0_8 = arith.constant 0 : index
    %7 = vector.load %arg2[%c0_7, %c0_8] : memref<1x512xf32, #tpu.memory_space<vmem>>, vector<1x512xf32>
    %8 = vector.broadcast %6 : vector<8x1xf32> to vector<8x512xf32>
    %9 = vector.broadcast %7 : vector<1x512xf32> to vector<8x512xf32>
    %10 = arith.mulf %8, %9 : vector<8x512xf32>
    %11 = arith.addf %5, %10 : vector<8x512xf32>
    %cst_9 = arith.constant 0.000000e+00 : f32
    %12 = vector.broadcast %cst_9 : f32 to vector<8x512xf32>
    %13 = arith.cmpf oge, %11, %12 : vector<8x512xf32>
    %cst_10 = arith.constant 2.000000e-01 : f32
    %14 = vector.broadcast %cst_10 : f32 to vector<8x512xf32>
    %15 = arith.mulf %14, %11 : vector<8x512xf32>
    %16 = arith.select %13, %11, %15 : vector<8x512xi1>, vector<8x512xf32>
    %c0_11 = arith.constant 0 : index
    %c0_12 = arith.constant 0 : index
    %17 = vector.load %arg6[%c0_11, %c0_12] : memref<8x2xf32, #tpu.memory_space<vmem>>, vector<8x2xf32>
    %c0_13 = arith.constant 0 : index
    %c0_14 = arith.constant 0 : index
    %18 = vector.load %arg7[%c0_13, %c0_14] : memref<8x2xf32, #tpu.memory_space<vmem>>, vector<8x2xf32>
    %19 = vector.extract_strided_slice %16 {offsets = [0, 0], sizes = [8, 256], strides = [1, 1]} : vector<8x512xf32> to vector<8x256xf32>
    %cst_15 = arith.constant dense<0.000000e+00> : vector<8xf32>
    %20 = vector.multi_reduction <add>, %19, %cst_15 [1] : vector<8x256xf32> to vector<8xf32>
    %21 = vector.shape_cast %20 : vector<8xf32> to vector<8x1xf32>
    %cst_16 = arith.constant 2.560000e+02 : f32
    %22 = vector.broadcast %cst_16 : f32 to vector<8x1xf32>
    %23 = arith.divf %21, %22 : vector<8x1xf32>
    %24 = vector.broadcast %23 : vector<8x1xf32> to vector<8x256xf32>
    %25 = arith.subf %19, %24 : vector<8x256xf32>
    %26 = arith.mulf %25, %25 : vector<8x256xf32>
    %cst_17 = arith.constant dense<0.000000e+00> : vector<8xf32>
    %27 = vector.multi_reduction <add>, %26, %cst_17 [1] : vector<8x256xf32> to vector<8xf32>
    %28 = vector.shape_cast %27 : vector<8xf32> to vector<8x1xf32>
    %cst_18 = arith.constant 2.560000e+02 : f32
    %29 = vector.broadcast %cst_18 : f32 to vector<8x1xf32>
    %30 = arith.divf %28, %29 : vector<8x1xf32>
    %31 = vector.broadcast %23 : vector<8x1xf32> to vector<8x256xf32>
    %32 = arith.subf %19, %31 : vector<8x256xf32>
    %cst_19 = arith.constant 9.99999974E-6 : f32
    %33 = vector.broadcast %cst_19 : f32 to vector<8x1xf32>
    %34 = arith.addf %30, %33 : vector<8x1xf32>
    %35 = math.rsqrt %34 : vector<8x1xf32>
    %36 = vector.broadcast %35 : vector<8x1xf32> to vector<8x256xf32>
    %37 = arith.mulf %32, %36 : vector<8x256xf32>
    %38 = vector.extract_strided_slice %17 {offsets = [0, 0], sizes = [8, 1], strides = [1, 1]} : vector<8x2xf32> to vector<8x1xf32>
    %39 = vector.broadcast %38 : vector<8x1xf32> to vector<8x256xf32>
    %40 = arith.mulf %39, %37 : vector<8x256xf32>
    %41 = vector.extract_strided_slice %18 {offsets = [0, 0], sizes = [8, 1], strides = [1, 1]} : vector<8x2xf32> to vector<8x1xf32>
    %42 = vector.broadcast %41 : vector<8x1xf32> to vector<8x256xf32>
    %43 = arith.addf %40, %42 : vector<8x256xf32>
    %c0_20 = arith.constant 0 : index
    %c0_21 = arith.constant 0 : index
    %c0_22 = arith.constant 0 : index
    %44 = vector.load %arg8[%c0_20, %c0_21, %c0_22] : memref<2x8x256xf32, #tpu.memory_space<vmem>>, vector<1x8x256xf32>
    %45 = vector.shape_cast %44 : vector<1x8x256xf32> to vector<8x256xf32>
    %46 = vector.shape_cast %43 : vector<8x256xf32> to vector<1x8x256xf32>
    tpu.vector_store %arg8[%c0_20, %c0_21, %c0_22], %46 {strides = array<i32>} : memref<2x8x256xf32, #tpu.memory_space<vmem>>, vector<1x8x256xf32>,
    %47 = vector.extract_strided_slice %16 {offsets = [0, 256], sizes = [8, 256], strides = [1, 1]} : vector<8x512xf32> to vector<8x256xf32>
    %cst_23 = arith.constant dense<0.000000e+00> : vector<8xf32>
    %48 = vector.multi_reduction <add>, %47, %cst_23 [1] : vector<8x256xf32> to vector<8xf32>
    %49 = vector.shape_cast %48 : vector<8xf32> to vector<8x1xf32>
    %cst_24 = arith.constant 2.560000e+02 : f32
    %50 = vector.broadcast %cst_24 : f32 to vector<8x1xf32>
    %51 = arith.divf %49, %50 : vector<8x1xf32>
    %52 = vector.broadcast %51 : vector<8x1xf32> to vector<8x256xf32>
    %53 = arith.subf %47, %52 : vector<8x256xf32>
    %54 = arith.mulf %53, %53 : vector<8x256xf32>
    %cst_25 = arith.constant dense<0.000000e+00> : vector<8xf32>
    %55 = vector.multi_reduction <add>, %54, %cst_25 [1] : vector<8x256xf32> to vector<8xf32>
    %56 = vector.shape_cast %55 : vector<8xf32> to vector<8x1xf32>
    %cst_26 = arith.constant 2.560000e+02 : f32
    %57 = vector.broadcast %cst_26 : f32 to vector<8x1xf32>
    %58 = arith.divf %56, %57 : vector<8x1xf32>
    %59 = vector.broadcast %51 : vector<8x1xf32> to vector<8x256xf32>
    %60 = arith.subf %47, %59 : vector<8x256xf32>
    %cst_27 = arith.constant 9.99999974E-6 : f32
    %61 = vector.broadcast %cst_27 : f32 to vector<8x1xf32>
    %62 = arith.addf %58, %61 : vector<8x1xf32>
    %63 = math.rsqrt %62 : vector<8x1xf32>
    %64 = vector.broadcast %63 : vector<8x1xf32> to vector<8x256xf32>
    %65 = arith.mulf %60, %64 : vector<8x256xf32>
    %66 = vector.extract_strided_slice %17 {offsets = [0, 1], sizes = [8, 1], strides = [1, 1]} : vector<8x2xf32> to vector<8x1xf32>
    %67 = vector.broadcast %66 : vector<8x1xf32> to vector<8x256xf32>
    %68 = arith.mulf %67, %65 : vector<8x256xf32>
    %69 = vector.extract_strided_slice %18 {offsets = [0, 1], sizes = [8, 1], strides = [1, 1]} : vector<8x2xf32> to vector<8x1xf32>
    %70 = vector.broadcast %69 : vector<8x1xf32> to vector<8x256xf32>
    %71 = arith.addf %68, %70 : vector<8x256xf32>
    %c1 = arith.constant 1 : index
    %c0_28 = arith.constant 0 : index
    %c0_29 = arith.constant 0 : index
    %72 = vector.load %arg8[%c1, %c0_28, %c0_29] : memref<2x8x256xf32, #tpu.memory_space<vmem>>, vector<1x8x256xf32>
    %73 = vector.shape_cast %72 : vector<1x8x256xf32> to vector<8x256xf32>
    %74 = vector.shape_cast %71 : vector<8x256xf32> to vector<1x8x256xf32>
    tpu.vector_store %arg8[%c1, %c0_28, %c0_29], %74 {strides = array<i32>} : memref<2x8x256xf32, #tpu.memory_space<vmem>>, vector<1x8x256xf32>,
    return
  }
  func.func @transform_0(%arg0: i32) -> (i32, i32) {
    %c0_i32 = arith.constant 0 : i32
    %c0_i32_0 = arith.constant 0 : i32
    %c0_i32_1 = arith.constant 0 : i32
    return %c0_i32, %c0_i32_0 : i32, i32
  }
  func.func @transform_1(%arg0: i32) -> (i32, i32) {
    %c0_i32 = arith.constant 0 : i32
    %c0_i32_0 = arith.constant 0 : i32
    %c0_i32_1 = arith.constant 0 : i32
    return %c0_i32, %c0_i32_0 : i32, i32
  }
  func.func @transform_2(%arg0: i32) -> (i32, i32) {
    %c0_i32 = arith.constant 0 : i32
    %c0_i32_0 = arith.constant 0 : i32
    %c0_i32_1 = arith.constant 0 : i32
    return %c0_i32, %c0_i32_0 : i32, i32
  }
  func.func @transform_3(%arg0: i32) -> (i32, i32) {
    %c0_i32 = arith.constant 0 : i32
    %c0_i32_0 = arith.constant 0 : i32
    %c0_i32_1 = arith.constant 0 : i32
    return %c0_i32, %c0_i32_0 : i32, i32
  }
  func.func @transform_4(%arg0: i32) -> (i32, i32) {
    %c0_i32 = arith.constant 0 : i32
    %c0_i32_0 = arith.constant 0 : i32
    %c0_i32_1 = arith.constant 0 : i32
    return %c0_i32, %c0_i32_0 : i32, i32
  }
  func.func @transform_5(%arg0: i32) -> (i32, i32) {
    %c0_i32 = arith.constant 0 : i32
    %c0_i32_0 = arith.constant 0 : i32
    %c0_i32_1 = arith.constant 0 : i32
    return %c0_i32, %c0_i32_0 : i32, i32
  }
  func.func @transform_6(%arg0: i32) -> (i32, i32) {
    %c0_i32 = arith.constant 0 : i32
    %c0_i32_0 = arith.constant 0 : i32
    %c0_i32_1 = arith.constant 0 : i32
    return %c0_i32, %c0_i32_0 : i32, i32
  }
  func.func @transform_7(%arg0: i32) -> (i32, i32, i32) {
    %c0_i32 = arith.constant 0 : i32
    %c0_i32_0 = arith.constant 0 : i32
    %c0_i32_1 = arith.constant 0 : i32
    %c0_i32_2 = arith.constant 0 : i32
    return %c0_i32, %c0_i32_0, %c0_i32_1 : i32, i32, i32
  }
}

</mosaic_0001>

<bundles_post_ra>
// kernel: tpu_custom_call.1
= control target key start
LH: loop header
LB: loop body
LE: loop exit
PB: predicated region body
PF: predicated region fallthrough
CT: control target
= control target key end

     0   :  { %12 = vsyncpa [#allocation3], 0  ;;  %s503_s0 = inlined_call_operand.hbm [shape: f32[36,512], index: 0, kind: input, shape index: {}]   ;;  %s504_s1 = inlined_call_operand.vmem [shape: f32[1,512], index: 1, kind: input, shape index: {}]   ;;  %s505_s2 = inlined_call_operand.vmem [shape: f32[8,36], index: 2, kind: input, shape index: {}]   ;;  %s506_s3 = inlined_call_operand.vmem [shape: f32[8,1], index: 3, kind: input, shape index: {}]   ;;  %s507_s4 = inlined_call_operand.vmem [shape: f32[8,1], index: 4, kind: input, shape index: {}]   ;;  %s508_s5 = inlined_call_operand.vmem [shape: f32[8,2], index: 5, kind: input, shape index: {}]   ;;  %s509_s6 = inlined_call_operand.vmem [shape: f32[8,2], index: 6, kind: input, shape index: {}]   ;;  %s510_s7 = inlined_call_operand.hbm [shape: f32[2,8,256], index: 7, kind: output, shape index: {}]  }
   0x1   :  { %13 = vsyncpa [#allocation4], 0  ;;  %s427_s24 = smov [#allocation2]  }
   0x2   :  { %s19_s25 = sshll.u32 %s427_s24, 4  ;;  %s20_s25 = int_to_ptr.vmem [resolvable:$true] %s19_s25 }
   0x3   :  { %s391_s26 = scalar_lea.vmem %s20_s25, 2560  ;;  %p396_p1 = scmp.lt.s32.totalorder %s20_s25, %s20_s25 }
   0x4   :  { %p392_p0 = scmp.ne.s32.totalorder %s20_s25, %s391_s26  ;;  %p397_p2 = scmp.lt.s32.totalorder %s391_s26, %s391_s26 }
   0x6   :  { %p398_p3 = por %p397_p2, %p396_p1 }
   0x8   :  { %p399_p4 = pnand %p398_p3, %p392_p0 }
   0xa   :  { %402 = shalt.err (!%p399_p4)
}
   0xb   :  { %s428_s27 = smov 512   ;;  %s429_s28 = smov 32  }
   0xc   :  { %25 = dma.hbm_to_vmem [thread:$0]  %s503_s0, 2560, %s20_s25, [#allocation3], %s428_s27, %s428_s27, %s429_s28  }
   0xd   :  { %423 = dma.done.wait [#allocation3], 2560  }
   0xe   :  { %424 = vsyncadd [#allocation3], 4294964736  ;;  %v430_v0 = vmov 0.0   ;;  %v431_v1 = vmov 0   ;;  %vm72_vm0 = vcmask 1043456   ;;  %v55_v6 = vld [vmem:[#allocation2 + $0x68] sm:$0xff]  ;;  %v235_v26 = vlaneseq }
   0xf   :  { %149 = vmatprep.mubr.f32.mxu0 %v430_v0  ;;  %220 = vmatprep.mubr.f32.mxu1 %v430_v0  ;;  %v59_v2 = vld [vmem:[#allocation2 + $0x88] sm:$0xf]  ;;  %v61_v3 = vld [vmem:[#allocation2 + $0x98] sm:$0xf]  ;;  %v58_v4 = vld [vmem:[#allocation2 + $0x80] sm:$0xf] }
  0x10   :  { %373 = vset.pattern.permute.xlu0 %v431_v1  ;;  %374 = vset.pattern.permute.xlu1 %v431_v1  ;;  %v60_v5 = vld [vmem:[#allocation2 + $0x90] sm:$0xf]  ;;  %v57_v7 = vld [vmem:[#allocation2 + $0x78] sm:$0xff]  ;;  %v54_v8 = vld [vmem:[#allocation2 + $0x60] sm:$0xff]  ;;  %vm68_vm1 = vcmask 293888   ;;  %v432_v25 = vmov 1  }
  0x11   :  { %358 = vmatprep.subr.msk.mxu0 %vm72_vm0, %v59_v2  ;;  %361 = vmatprep.subr.msk.mxu1 %vm72_vm0, %v61_v3  ;;  %v56_v9 = vld [vmem:[#allocation2 + $0x70] sm:$0xff]  ;;  %v51_v10 = vld [vmem:[#allocation2 + $0x48] sm:$0xff]  ;;  %v53_v11 = vld [vmem:[#allocation2 + $0x58] sm:$0xff]  ;;  %v236_v27 = vshrl.u32 %v235_v26, 7 }
  0x12   :  { %359 = vmatpush1.msk.msra.mxu0 %vm72_vm0, %v58_v4  ;;  %362 = vmatpush1.msk.msra.mxu1 %vm72_vm0, %v60_v5  ;;  %v50_v12 = vld [vmem:[#allocation2 + $0x40] sm:$0xff]  ;;  %v52_v13 = vld [vmem:[#allocation2 + $0x50] sm:$0xff]  ;;  %v47_v14 = vld [vmem:[#allocation2 + $0x28] sm:$0xff] }
  0x13   :  { %109 = vmatprep.subr.mxu0 %v55_v6  ;;  %180 = vmatprep.subr.mxu1 %v57_v7  ;;  %v49_v15 = vld [vmem:[#allocation2 + $0x38] sm:$0xff]  ;;  %v46_v16 = vld [vmem:[#allocation2 + $0x20] sm:$0xff]  ;;  %v48_v17 = vld [vmem:[#allocation2 + $0x30] sm:$0xff]  ;;  %v237_v29 = vsub.s32 0, %v236_v27  ;;  %v245_v31 = vsub.s32 2, %v236_v27  ;;  %v241_v32 = vsub.s32 1, %v236_v27 }
  0x14   :  { %110 = vmatpush1.msra.mxu0 %v54_v8  ;;  %181 = vmatpush1.msra.mxu1 %v56_v9  ;;  %v43_v18 = vld [vmem:[#allocation2 + $0x8] sm:$0xff]  ;;  %v45_v19 = vld [vmem:[#allocation2 + $0x18] sm:$0xff]  ;;  %v42_v20 = vld [vmem:[#allocation2] sm:$0xff]  ;;  %v249_v33 = vsub.s32 3, %v236_v27 }
  0x15   :  { %111 = vmatprep.subr.mxu0 %v51_v10  ;;  %182 = vmatprep.subr.mxu1 %v53_v11  ;;  %v44_v21 = vld [vmem:[#allocation2 + $0x10] sm:$0xff]  ;;  %v41_v22 = vld [vmem:[%s505_s2] sm:$0xff] }
  0x16   :  { %112 = vmatpush1.msra.mxu0 %v50_v12  ;;  %183 = vmatpush1.msra.mxu1 %v52_v13  ;;  %v62_v23 = vld [vmem:[%s506_s3] sm:$0xff] }
  0x17   :  { %113 = vmatprep.subr.mxu0 %v47_v14  ;;  %184 = vmatprep.subr.mxu1 %v49_v15  ;;  %v227_v24 = vld [vmem:[%s507_s4] sm:$0xff] }
  0x18   :  { %114 = vmatpush1.msra.mxu0 %v46_v16  ;;  %185 = vmatpush1.msra.mxu1 %v48_v17  ;;  %v228_v30 = vld [vmem:[%s504_s1] sm:$0xf] }
  0x19   :  { %115 = vmatprep.subr.mxu0 %v43_v18  ;;  %186 = vmatprep.subr.mxu1 %v45_v19  ;;  %v238_v34 = vrot.slane %v228_v30, %v237_v29  ;;  %v246_v36 = vrot.slane %v228_v30, %v245_v31  ;;  %v242_v37 = vrot.slane %v228_v30, %v241_v32  ;;  %v275_v2 = vld [vmem:[%s508_s5] sm:$0xff]  ;;  %s433_s5 = smov [#allocation5]  }
  0x1a   :  { %116 = vmatpush1.msra.mxu0 %v42_v20  ;;  %187 = vmatpush1.msra.mxu1 %v44_v21  ;;  %v250_v38 = vrot.slane %v228_v30, %v249_v33  ;;  %v276_v3 = vld [vmem:[%s509_s6] sm:$0xff]  ;;  %s346_s6 = sshll.u32 %s433_s5, 4  ;;  %s347_s6 = int_to_ptr.vmem [resolvable:$true] %s346_s6 }
  0x1b   :  { %360 = vmatmul.mubr.msk.f32.vlgmr.msra.gmra.mxu0 %vm68_vm1, %v41_v22  ;;  %363 = vmatmul.mubr.msk.f32.vlgmr.msra.gmra.mxu1 %vm68_vm1, %v41_v22  ;;  %s403_s15 = scalar_lea.vmem %s347_s6, 512  ;;  %p408_p6 = scmp.lt.s32.totalorder %s347_s6, %s347_s6 }
  0x1c   :  { %65 = vperm.xlu0 %373, %v62_v23   ;;  %p404_p5 = scmp.ne.s32.totalorder %s347_s6, %s403_s15  ;;  %p409_p7 = scmp.lt.s32.totalorder %s403_s15, %s403_s15 }
  0x1e   :  { %p410_p8 = por %p409_p7, %p408_p6 }
  0x20   :  { %231 = vperm.xlu0 %373, %v227_v24   ;;  %p411_p9 = pnand %p410_p8, %p404_p5 }
  0x24   :  { %378 = vset.pattern.permute.xlu0 %v432_v25 }
  0x97   :  { %v66_v28 = vpop.permute.xlu0 %65 }
  0x9b   :  { %v232_v35 = vpop.permute.xlu0 %231 }
  0x9c   :  { %v255_v42 = vmul.f32 %v238_v34, %v232_v35  ;;  %v257_v44 = vmul.f32 %v246_v36, %v232_v35  ;;  %v256_v46 = vmul.f32 %v242_v37, %v232_v35  ;;  %v258_v51 = vmul.f32 %v250_v38, %v232_v35 }
  0xdb   :  { %v151_v39 = vpop.f32.mrf.mxu0  ;;  %v222_v40 = vpop.f32.mrf.mxu1 }
  0xdc   :  { %v152_v41 = vadd.f32 %v151_v39, %v66_v28  ;;  %v223_v43 = vadd.f32 %v222_v40, %v66_v28 }
  0xdd   :  { %v153_v45 = vpop.f32.mrf.mxu0  ;;  %v224_v47 = vpop.f32.mrf.mxu1 }
  0xde   :  { %v259_v48 = vadd.f32 %v255_v42, %v152_v41  ;;  %v154_v49 = vadd.f32 %v153_v45, %v66_v28  ;;  %v225_v50 = vadd.f32 %v224_v47, %v66_v28  ;;  %v261_v52 = vadd.f32 %v257_v44, %v223_v43 }
  0xe0   :  { %v260_v53 = vadd.f32 %v256_v46, %v154_v49  ;;  %v262_v54 = vadd.f32 %v258_v51, %v225_v50  ;;  %v267_v55 = vmul.f32 0.2, %v259_v48  ;;  %vm263_vm2 = vcmp.ge.f32.partialorder %v259_v48, 0.0 }
  0xe1   :  { %v269_v60 = vmul.f32 0.2, %v261_v52  ;;  %vm265_vm5 = vcmp.ge.f32.partialorder %v261_v52, 0.0 }
  0xe2   :  { %vm264_vm3 = vcmp.ge.f32.partialorder %v260_v53, 0.0  ;;  %v268_v56 = vmul.f32 0.2, %v260_v53  ;;  %vm266_vm4 = vcmp.ge.f32.partialorder %v262_v54, 0.0  ;;  %v270_v57 = vmul.f32 0.2, %v262_v54 }
  0xe3   :  { %v271_v58 = vsel %vm263_vm2, %v259_v48, %v267_v55  ;;  %v273_v63 = vsel %vm265_vm5, %v261_v52, %v269_v60 }
  0xe4   :  { %v272_v59 = vsel %vm264_vm3, %v260_v53, %v268_v56  ;;  %v274_v62 = vsel %vm266_vm4, %v262_v54, %v270_v57 }
  0xe5   :  { %v277_v61 = vadd.f32 %v272_v59, %v271_v58  ;;  %v310_v0 = vadd.f32 %v274_v62, %v273_v63 }
  0xe7   :  { %278 = vadd.xlane.f32.xlu1 %v277_v61 }
  0xeb   :  { %311 = vadd.xlane.f32.xlu1 %v310_v0 }
  0xfc   :  { %296 = vperm.xlu1 %374, %v275_v2  }
 0x100   :  { %375 = vset.pattern.permute.xlu1 %v432_v25 }
 0x101   :  { %327 = vperm.xlu1 %375, %v275_v2  }
 0x105   :  { %376 = vset.pattern.permute.xlu1 %v431_v1 }
 0x106   :  { %303 = vperm.xlu1 %376, %v276_v3  }
 0x10a   :  { %377 = vset.pattern.permute.xlu1 %v432_v25 }
 0x170   :  { %v279_v4 = vpop.xlane.xlu1 %278 }
 0x171   :  { %v281_v5 = vmul.f32 0.00390625, %v279_v4 }
 0x173   :  { %v282_v6 = vsub.f32 %v271_v58, %v281_v5  ;;  %v283_v7 = vsub.f32 %v272_v59, %v281_v5 }
 0x174   :  { %v312_v8 = vpop.xlane.xlu1 %311 }
 0x175   :  { %v313_v9 = vmul.f32 0.00390625, %v312_v8  ;;  %v284_v10 = vmul.f32 %v282_v6, %v282_v6  ;;  %v285_v11 = vmul.f32 %v283_v7, %v283_v7 }
 0x177   :  { %v314_v12 = vsub.f32 %v273_v63, %v313_v9  ;;  %v315_v13 = vsub.f32 %v274_v62, %v313_v9  ;;  %v286_v14 = vadd.f32 %v285_v11, %v284_v10 }
 0x178   :  { %v297_v1 = vpop.permute.xlu1 %296 }
 0x179   :  { %287 = vadd.xlane.f32.xlu0 %v286_v14  ;;  %v316_v15 = vmul.f32 %v314_v12, %v314_v12  ;;  %v317_v16 = vmul.f32 %v315_v13, %v315_v13 }
 0x17b   :  { %v318_v17 = vadd.f32 %v317_v16, %v316_v15 }
 0x17c   :  { %v328_v18 = vpop.permute.xlu1 %327 }
 0x17d   :  { %319 = vadd.xlane.f32.xlu1 %v318_v17 }
 0x181   :  { %v304_v19 = vpop.permute.xlu1 %303 }
 0x18e   :  { %333 = vperm.xlu1 %377, %v276_v3  }
 0x202   :  { %v288_v20 = vpop.xlane.xlu0 %287 }
 0x203   :  { %v289_v21 = vmul.f32 0.00390625, %v288_v20 }
 0x205   :  { %v290_v22 = vadd.f32 1e-05, %v289_v21 }
 0x206   :  { %v320_v23 = vpop.xlane.xlu1 %319 }
 0x207   :  { %379 = vrsqrt.f32 %v290_v22  ;;  %v321_v24 = vmul.f32 0.00390625, %v320_v23 }
 0x209   :  { %v322_v25 = vadd.f32 1e-05, %v321_v24 }
 0x20a   :  { %v334_v36 = vpop.permute.xlu1 %333 }
 0x20b   :  { %381 = vrsqrt.f32 %v322_v25 }
 0x214   :  { %v380_v26 = vpop.eup %379 }
 0x215   :  { %v292_v27 = vmul.f32 %v380_v26, %v282_v6  ;;  %v293_v28 = vmul.f32 %v380_v26, %v283_v7 }
 0x217   :  { %v299_v29 = vmul.f32 %v297_v1, %v292_v27  ;;  %v300_v30 = vmul.f32 %v297_v1, %v293_v28 }
 0x218   :  { %v382_v31 = vpop.eup %381 }
 0x219   :  { %v324_v32 = vmul.f32 %v382_v31, %v314_v12  ;;  %v325_v33 = vmul.f32 %v382_v31, %v315_v13  ;;  %v306_v34 = vadd.f32 %v304_v19, %v299_v29  ;;  %v307_v35 = vadd.f32 %v304_v19, %v300_v30 }
 0x21b   :  { %v330_v37 = vmul.f32 %v328_v18, %v324_v32  ;;  %v331_v38 = vmul.f32 %v328_v18, %v325_v33  ;;  %308 = vst [vmem:[#allocation5] sm:$0xff] %v306_v34  ;;  %309 = vst [vmem:[#allocation5 + $0x8] sm:$0xff] %v307_v35 }
 0x21d   :  { %v336_v39 = vadd.f32 %v334_v36, %v330_v37  ;;  %v337_v40 = vadd.f32 %v334_v36, %v331_v38 }
 0x21f   :  { %339 = vst [vmem:[#allocation5 + $0x10] sm:$0xff] %v336_v39  ;;  %340 = vst [vmem:[#allocation5 + $0x18] sm:$0xff] %v337_v40 }
 0x220   :  { %414 = shalt.err (!%p411_p9)
}
 0x221   :  { %s434_s16 = smov 256   ;;  %s435_s17 = smov 16  }
 0x222   :  { %352 = dma.vmem_to_hbm [thread:$0]  %s347_s6, 512, %s510_s7, [#allocation4], %s434_s16, %s434_s16, %s435_s17  }
 0x223   :  { %425 = dma.done.wait [#allocation4], 512  }
 0x224   :  { %426 = vsyncadd [#allocation4], 4294966784 }
 0x225   :  { %356 = vsyncpa [#allocation3], 1 }
 0x226   :  { %357 = vsyncpa [#allocation4], 1 }

</bundles_post_ra>
